<compile_context>
chip_gen: v5e
topology: v5e:2x2
jax: 0.10.0
libtpu: 0.0.40
codegen_flags: <defaults>
</compile_context>

<pallas_src>
import functools

import jax
import jax.numpy as jnp
from jax.experimental import pallas as pl
from jax.experimental.pallas import tpu as pltpu


def _round_up(v, m):
    return ((v + m - 1) // m) * m


def _fused_ffn_kernel(x_hbm, w1_ref, b1_ref, w2_ref, b2_ref, o_ref,
                      xwin_ref, dma_sem, *, k, pad, tile_t, win, hwin,
                      t1_len, compute_dtype):
    """One (batch, time-tile) step of the fused conv1 -> ReLU -> conv2 FFN.

    x_hbm    : (B, T_pad, Cin_p) in HBM (pl.ANY); manually DMA'd per tile
    w1_ref   : (k, Cin_p, H_p)   conv1 weights (tap-major, channels-last), VMEM
    b1_ref   : (1, H_p)          conv1 bias (f32)
    w2_ref   : (k, H_p, Cout_p)  conv2 weights, VMEM
    b2_ref   : (1, Cout_p)       conv2 bias (f32)
    o_ref    : (1, tile_t, Cout_p) output tile
    xwin_ref : (2, win, Cin_p)   double-buffered input halo-window scratch
    dma_sem  : (2,)              DMA semaphores
    """
    b = pl.program_id(0)
    t = pl.program_id(1)
    n_t = pl.num_programs(1)
    slot = t % 2

    def start_fetch(tile_idx, buf_slot):
        # tile_idx * tile_t is statically a multiple of 8 (tile_t is rounded).
        pltpu.make_async_copy(
            x_hbm.at[b, pl.ds(tile_idx * tile_t, win), :],
            xwin_ref.at[buf_slot],
            dma_sem.at[buf_slot],
        ).start()

    # First tile of this batch row: nothing in flight yet -> issue its fetch.
    # TODO(synk): cross-row prefetch (fetch row b+1's first window at t==n_t-1)
    # would hide this cold DMA but interacts with megacore b-sharding on v7x.
    @pl.when(t == 0)
    def _():
        start_fetch(0, 0)

    # Prefetch the next tile's window; overlaps with this tile's compute.
    @pl.when(t + 1 < n_t)
    def _():
        start_fetch(t + 1, 1 - slot)

    # Wait for the current tile's window.
    pltpu.make_async_copy(
        x_hbm.at[b, pl.ds(t * tile_t, win), :],
        xwin_ref.at[slot],
        dma_sem.at[slot],
    ).wait()

    hdim = w1_ref.shape[-1]
    cout = w2_ref.shape[-1]

    xw = xwin_ref[slot]                                     # (win, Cin_p)

    # ---- conv1: k per-tap deep dots accumulated in f32 (no concatenated
    #      (hwin, k*Cin) operand is materialized), then bias + ReLU.
    acc1 = jnp.zeros((hwin, hdim), jnp.float32)
    for j in range(k):
        acc1 = acc1 + jnp.dot(xw[j:j + hwin, :], w1_ref[j],
                              preferred_element_type=jnp.float32)
    h = jnp.maximum(acc1 + b1_ref[...].astype(jnp.float32), 0.0)

    # ---- boundary fix: torch's second Conv1d sees h zero-padded by `pad`;
    #      zero any local hidden row whose global index is outside [0, T1).
    row = jax.lax.broadcasted_iota(jnp.int32, (hwin, hdim), 0)
    g_idx = row + (t * tile_t - pad)
    h = jnp.where((g_idx >= 0) & (g_idx < t1_len), h, 0.0)

    # TODO(synk): dropout is identity (eval mode); training-mode dropout would
    # draw a mask with pltpu.prng_seed / pltpu.stateful_bernoulli here.

    # ---- conv2: k per-tap dots straight from the in-register hidden tile
    #      (the (B, T, H) intermediate never touches HBM).
    hc = h.astype(compute_dtype)
    acc2 = jnp.zeros((tile_t, cout), jnp.float32)
    for j in range(k):
        acc2 = acc2 + jnp.dot(hc[j:j + tile_t, :], w2_ref[j],
                              preferred_element_type=jnp.float32)
    out = acc2 + b2_ref[...].astype(jnp.float32)
    o_ref[0] = out.astype(o_ref.dtype)


def multi_layered_conv1d(x, params, *, tile_t=None, compute_dtype=jnp.bfloat16,
                         vmem_limit_bytes=None):
    """Forward pass matching MultiLayeredConv1d.forward (eval mode).

    x: (B, T, in_chans) channels-last  ->  (B, T_out, in_chans)
    params: w1 (k, Cin, H), b1 (H,), w2 (k, H, Cout), b2 (Cout,)
    """
    B, T, Cin = x.shape
    w1, b1, w2, b2 = params["w1"], params["b1"], params["w2"], params["b2"]
    k, w1_cin, H = w1.shape
    k2, w2_h, Cout = w2.shape
    assert w1_cin == Cin and k2 == k and w2_h == H

    out_dtype = x.dtype
    if compute_dtype is None:
        compute_dtype = jnp.bfloat16

    pad = (k - 1) // 2
    T1 = T + 2 * pad - (k - 1)          # conv1 output length (torch semantics)
    T_out = T1 + 2 * pad - (k - 1)      # conv2 output length
    assert T_out >= 1

    # Lane-dense channel padding (zeros -> results unchanged, sliced off later).
    Cin_p = _round_up(Cin, 128)
    H_p = _round_up(H, 128)
    Cout_p = _round_up(Cout, 128)

    # Time tiling: 512 default (>=85% HBM roofline on v5e/v6e; two full 256-row
    # MXU passes per weight push; amortizes per-grid-step overhead).
    if tile_t is None:
        tile_t = 512
    tile_t = max(8, _round_up(min(tile_t, _round_up(T_out, 8)), 8))
    n_t = pl.cdiv(T_out, tile_t)
    T_out_pad = n_t * tile_t

    win = tile_t + 2 * (k - 1)          # x rows needed per output tile
    hwin = tile_t + (k - 1)             # hidden rows needed per output tile

    # Left halo 2*pad; right halo covers the last (possibly ragged) window.
    left = 2 * pad
    right = max(T_out_pad + 2 * (k - 1) - left - T, 0)
    x_pad = jnp.pad(x.astype(compute_dtype),
                    ((0, 0), (left, right), (0, Cin_p - Cin)))

    w1p = jnp.pad(w1, ((0, 0), (0, Cin_p - Cin), (0, H_p - H))).astype(compute_dtype)
    w2p = jnp.pad(w2, ((0, 0), (0, H_p - H), (0, Cout_p - Cout))).astype(compute_dtype)
    b1p = jnp.pad(b1, (0, H_p - H)).reshape(1, H_p).astype(jnp.float32)
    b2p = jnp.pad(b2, (0, Cout_p - Cout)).reshape(1, Cout_p).astype(jnp.float32)

    kernel = functools.partial(
        _fused_ffn_kernel, k=k, pad=pad, tile_t=tile_t, win=win, hwin=hwin,
        t1_len=T1, compute_dtype=compute_dtype)

    cp_kwargs = dict(dimension_semantics=("parallel", "arbitrary"))
    if vmem_limit_bytes is not None:
        # e.g. 96 MiB on v5e/v6e (128 MiB physical), <=48 MiB on v7x (64 MiB).
        cp_kwargs["vmem_limit_bytes"] = vmem_limit_bytes

    out = pl.pallas_call(
        kernel,
        out_shape=jax.ShapeDtypeStruct((B, T_out_pad, Cout_p), out_dtype),
        grid_spec=pltpu.PrefetchScalarGridSpec(
            num_scalar_prefetch=0,
            grid=(B, n_t),
            in_specs=[
                pl.BlockSpec(memory_space=pl.ANY),                       # x (HBM)
                pl.BlockSpec((k, Cin_p, H_p), lambda b, t: (0, 0, 0)),   # w1
                pl.BlockSpec((1, H_p), lambda b, t: (0, 0)),             # b1
                pl.BlockSpec((k, H_p, Cout_p), lambda b, t: (0, 0, 0)),  # w2
                pl.BlockSpec((1, Cout_p), lambda b, t: (0, 0)),          # b2
            ],
            out_specs=pl.BlockSpec((1, tile_t, Cout_p), lambda b, t: (b, t, 0)),
            scratch_shapes=[
                pltpu.VMEM((2, win, Cin_p), compute_dtype),  # halo window x2
                pltpu.SemaphoreType.DMA((2,)),
            ],
        ),
        compiler_params=pltpu.CompilerParams(**cp_kwargs),
    )(x_pad, w1p, b1p, w2p, b2p)

    return out[:, :T_out, :Cout]


def params_from_torch(w1_oik, b1, w2_oik, b2):
    """Convert torch Conv1d weights (Cout, Cin, k) -> kernel layout (k, Cin, Cout).

    torch Conv1d is cross-correlation, so no tap flip is needed.
    """
    return {"w1": jnp.transpose(jnp.asarray(w1_oik), (2, 1, 0)),
            "b1": jnp.asarray(b1),
            "w2": jnp.transpose(jnp.asarray(w2_oik), (2, 1, 0)),
            "b2": jnp.asarray(b2)}


def init_params(key, in_chans, hidden_chans, kernel_size, dtype=jnp.float32):
    """Deterministic synthetic parameters (PyTorch Conv1d-like fan-in scale)."""
    k1, k2, k3, k4 = jax.random.split(key, 4)
    s1 = 1.0 / (in_chans * kernel_size) ** 0.5
    s2 = 1.0 / (hidden_chans * kernel_size) ** 0.5
    return {
        # stored tap-major channels-last: (k, Cin, Cout)
        "w1": jax.random.uniform(k1, (kernel_size, in_chans, hidden_chans),
                                 dtype, -s1, s1),
        "b1": jax.random.uniform(k2, (hidden_chans,), dtype, -s1, s1),
        "w2": jax.random.uniform(k3, (kernel_size, hidden_chans, in_chans),
                                 dtype, -s2, s2),
        "b2": jax.random.uniform(k4, (in_chans,), dtype, -s2, s2),
    }


def _reference(x, params):
    """Pure-JAX reference (matches torch zero-padded Conv1d semantics)."""
    hi = jax.lax.Precision.HIGHEST

    def conv(xx, w, b, relu):
        k = w.shape[0]
        pad = (k - 1) // 2
        xp = jnp.pad(xx, ((0, 0), (pad, pad), (0, 0)))
        T_out = xp.shape[1] - k + 1
        acc = sum(jnp.einsum("btc,cd->btd", xp[:, j:j + T_out, :], w[j],
                             precision=hi)
                  for j in range(k)) + b
        return jnp.maximum(acc, 0.0) if relu else acc

    h = conv(x, params["w1"], params["b1"], True)
    return conv(h, params["w2"], params["b2"], False)


if __name__ == "__main__":
    B, T = 2, 16
    in_chans, hidden_chans, kernel_size = 4, 32, 3

    key = jax.random.PRNGKey(0)
    kx, kp = jax.random.split(key)
    x = jax.random.normal(kx, (B, T, in_chans), dtype=jnp.float32)
    params = init_params(kp, in_chans, hidden_chans, kernel_size)

    ref = _reference(x, params)

    # f32-operand path; tile_t=8 so the demo exercises T-tiling + double
    # buffering (grid = (2, 2)).
    out_f32 = multi_layered_conv1d(x, params, tile_t=8,
                                   compute_dtype=jnp.float32)
    out_f32 = jax.block_until_ready(out_f32)
    assert out_f32.shape == (B, T, in_chans), out_f32.shape
    assert jnp.allclose(out_f32, ref, atol=2e-2, rtol=2e-2), \
        "f32 mismatch vs ref"

    # Default bf16-operand / f32-accumulation path (production MXU config);
    # default tile_t (single time tile here) exercises the n_t == 1 path.
    out_bf16 = multi_layered_conv1d(x, params)
    out_bf16 = jax.block_until_ready(out_bf16)
    assert out_bf16.shape == (B, T, in_chans), out_bf16.shape
    assert jnp.allclose(out_bf16, ref, atol=6e-2, rtol=6e-2), \
        "bf16 mismatch vs ref"

    print("KERNEL_OK")
</pallas_src>

<mosaic_0001>
module attributes {stable_mosaic.version = 11 : i64} {
  func.func @_fused_ffn_kernel(%arg0: i32, %arg1: i32, %arg2: memref<2x20x128xf32, #tpu.memory_space<any>>, %arg3: memref<3x128x128xf32, #tpu.memory_space<vmem>>, %arg4: memref<1x128xf32, #tpu.memory_space<vmem>>, %arg5: memref<3x128x128xf32, #tpu.memory_space<vmem>>, %arg6: memref<1x128xf32, #tpu.memory_space<vmem>>, %arg7: memref<1x8x128xf32, #tpu.memory_space<vmem>>, %arg8: memref<2x12x128xf32, #tpu.memory_space<vmem>>, %arg9: memref<2x!tpu.dma_semaphore, #tpu.memory_space<semaphore_mem>>) attributes {dimension_semantics = [#tpu.dimension_semantics<parallel>, #tpu.dimension_semantics<arbitrary>], iteration_bounds = array<i64: 2, 2>, scalar_prefetch = 0 : i64, scratch_operands = 2 : i64, tpu.core_type = #tpu.core_type<tc>, window_params = [{}, {pipeline_mode = #tpu.pipeline_mode<synchronous>, transform_indices = @transform_1, window_bounds = array<i64: 3, 128, 128>}, {pipeline_mode = #tpu.pipeline_mode<synchronous>, transform_indices = @transform_2, window_bounds = array<i64: 1, 128>}, {pipeline_mode = #tpu.pipeline_mode<synchronous>, transform_indices = @transform_3, window_bounds = array<i64: 3, 128, 128>}, {pipeline_mode = #tpu.pipeline_mode<synchronous>, transform_indices = @transform_4, window_bounds = array<i64: 1, 128>}, {transform_indices = @transform_5, window_bounds = array<i64: 1, 8, 128>}]} {
    %c2_i32 = arith.constant 2 : i32
    %c0_i32 = arith.constant 0 : i32
    %0 = arith.cmpi eq, %c2_i32, %c0_i32 : i32
    %c1_i32 = arith.constant 1 : i32
    %1 = arith.select %0, %c1_i32, %c2_i32 : i32
    %2 = arith.remsi %arg1, %1 : i32
    %c0_i32_0 = arith.constant 0 : i32
    %3 = arith.cmpi ne, %2, %c0_i32_0 : i32
    %c0_i32_1 = arith.constant 0 : i32
    %4 = arith.cmpi slt, %2, %c0_i32_1 : i32
    %c0_i32_2 = arith.constant 0 : i32
    %5 = arith.cmpi slt, %1, %c0_i32_2 : i32
    %6 = arith.xori %4, %5 : i1
    %7 = arith.andi %6, %3 : i1
    %8 = arith.addi %2, %1 : i32
    %9 = arith.select %7, %8, %2 : i32
    %c0_i32_3 = arith.constant 0 : i32
    %10 = arith.cmpi eq, %arg1, %c0_i32_3 : i32
    %11 = arith.extui %10 : i1 to i32
    %c0_i32_4 = arith.constant 0 : i32
    %12 = arith.cmpi ne, %11, %c0_i32_4 : i32
    scf.if %12 {
      %c0_i32_47 = arith.constant 0 : i32
      %c0_i32_48 = arith.constant 0 : i32
      %c0_i32_49 = arith.constant 0 : i32
      %c0_i32_50 = arith.constant 0 : i32
      %82 = tpu.memref_slice %arg2[%arg0, %c0_i32_49, %c0_i32_50] : memref<2x20x128xf32, #tpu.memory_space<any>> -> memref<1x12x128xf32, #tpu.memory_space<any>>
      %83 = tpu.memref_squeeze %82 : memref<1x12x128xf32, #tpu.memory_space<any>> -> memref<12x128xf32, #tpu.memory_space<any>>
      %c0_i32_51 = arith.constant 0 : i32
      %c0_i32_52 = arith.constant 0 : i32
      %84 = tpu.memref_slice %arg8[%c0_i32_47, %c0_i32_51, %c0_i32_52] : memref<2x12x128xf32, #tpu.memory_space<vmem>> -> memref<1x12x128xf32, #tpu.memory_space<vmem>>
      %85 = tpu.memref_squeeze %84 : memref<1x12x128xf32, #tpu.memory_space<vmem>> -> memref<12x128xf32, #tpu.memory_space<vmem>>
      %86 = tpu.memref_slice %arg9[%c0_i32_48] : memref<2x!tpu.dma_semaphore, #tpu.memory_space<semaphore_mem>> -> memref<1x!tpu.dma_semaphore, #tpu.memory_space<semaphore_mem>>
      %87 = tpu.memref_squeeze %86 : memref<1x!tpu.dma_semaphore, #tpu.memory_space<semaphore_mem>> -> memref<!tpu.dma_semaphore, #tpu.memory_space<semaphore_mem>>
      tpu.enqueue_dma source(%83 : memref<12x128xf32, #tpu.memory_space<any>>) target(%85 : memref<12x128xf32, #tpu.memory_space<vmem>>) target_semaphore(%87 : memref<!tpu.dma_semaphore, #tpu.memory_space<semaphore_mem>>)
    } else {
    }
    %c1_i32_5 = arith.constant 1 : i32
    %13 = arith.addi %arg1, %c1_i32_5 : i32
    %c2_i32_6 = arith.constant 2 : i32
    %14 = arith.cmpi slt, %13, %c2_i32_6 : i32
    %15 = arith.extui %14 : i1 to i32
    %c0_i32_7 = arith.constant 0 : i32
    %16 = arith.cmpi ne, %15, %c0_i32_7 : i32
    scf.if %16 {
      %c1_i32_47 = arith.constant 1 : i32
      %82 = arith.addi %arg1, %c1_i32_47 : i32
      %c1_i32_48 = arith.constant 1 : i32
      %83 = arith.subi %c1_i32_48, %9 : i32
      %c8_i32_49 = arith.constant 8 : i32
      %84 = arith.muli %82, %c8_i32_49 : i32
      %c0_i32_50 = arith.constant 0 : i32
      %85 = tpu.memref_slice %arg2[%arg0, %84, %c0_i32_50] : memref<2x20x128xf32, #tpu.memory_space<any>> -> memref<1x12x128xf32, #tpu.memory_space<any>>
      %86 = tpu.memref_squeeze %85 : memref<1x12x128xf32, #tpu.memory_space<any>> -> memref<12x128xf32, #tpu.memory_space<any>>
      %c0_i32_51 = arith.constant 0 : i32
      %c0_i32_52 = arith.constant 0 : i32
      %87 = tpu.memref_slice %arg8[%83, %c0_i32_51, %c0_i32_52] : memref<2x12x128xf32, #tpu.memory_space<vmem>> -> memref<1x12x128xf32, #tpu.memory_space<vmem>>
      %88 = tpu.memref_squeeze %87 : memref<1x12x128xf32, #tpu.memory_space<vmem>> -> memref<12x128xf32, #tpu.memory_space<vmem>>
      %89 = tpu.memref_slice %arg9[%83] : memref<2x!tpu.dma_semaphore, #tpu.memory_space<semaphore_mem>> -> memref<1x!tpu.dma_semaphore, #tpu.memory_space<semaphore_mem>>
      %90 = tpu.memref_squeeze %89 : memref<1x!tpu.dma_semaphore, #tpu.memory_space<semaphore_mem>> -> memref<!tpu.dma_semaphore, #tpu.memory_space<semaphore_mem>>
      tpu.enqueue_dma source(%86 : memref<12x128xf32, #tpu.memory_space<any>>) target(%88 : memref<12x128xf32, #tpu.memory_space<vmem>>) target_semaphore(%90 : memref<!tpu.dma_semaphore, #tpu.memory_space<semaphore_mem>>)
    } else {
    }
    %c8_i32 = arith.constant 8 : i32
    %17 = arith.muli %arg1, %c8_i32 : i32
    %c0_i32_8 = arith.constant 0 : i32
    %18 = tpu.memref_slice %arg2[%arg0, %17, %c0_i32_8] : memref<2x20x128xf32, #tpu.memory_space<any>> -> memref<1x12x128xf32, #tpu.memory_space<any>>
    %19 = tpu.memref_squeeze %18 : memref<1x12x128xf32, #tpu.memory_space<any>> -> memref<12x128xf32, #tpu.memory_space<any>>
    %c0_i32_9 = arith.constant 0 : i32
    %c0_i32_10 = arith.constant 0 : i32
    %20 = tpu.memref_slice %arg8[%9, %c0_i32_9, %c0_i32_10] : memref<2x12x128xf32, #tpu.memory_space<vmem>> -> memref<1x12x128xf32, #tpu.memory_space<vmem>>
    %21 = tpu.memref_squeeze %20 : memref<1x12x128xf32, #tpu.memory_space<vmem>> -> memref<12x128xf32, #tpu.memory_space<vmem>>
    %22 = tpu.memref_slice %arg9[%9] : memref<2x!tpu.dma_semaphore, #tpu.memory_space<semaphore_mem>> -> memref<1x!tpu.dma_semaphore, #tpu.memory_space<semaphore_mem>>
    %23 = tpu.memref_squeeze %22 : memref<1x!tpu.dma_semaphore, #tpu.memory_space<semaphore_mem>> -> memref<!tpu.dma_semaphore, #tpu.memory_space<semaphore_mem>>
    tpu.wait_dma2 semaphore(%23 : memref<!tpu.dma_semaphore, #tpu.memory_space<semaphore_mem>>) src(%19 : memref<12x128xf32, #tpu.memory_space<any>>) dst(%21 : memref<12x128xf32, #tpu.memory_space<vmem>>)
    %24 = arith.index_cast %9 : i32 to index
    %c0 = arith.constant 0 : index
    %c0_11 = arith.constant 0 : index
    %25 = vector.load %arg8[%24, %c0, %c0_11] : memref<2x12x128xf32, #tpu.memory_space<vmem>>, vector<1x12x128xf32>
    %26 = vector.shape_cast %25 : vector<1x12x128xf32> to vector<12x128xf32>
    %cst = arith.constant 0.000000e+00 : f32
    %27 = vector.broadcast %cst : f32 to vector<10x128xf32>
    %28 = vector.extract_strided_slice %26 {offsets = [0, 0], sizes = [10, 128], strides = [1, 1]} : vector<12x128xf32> to vector<10x128xf32>
    %c0_12 = arith.constant 0 : index
    %c0_13 = arith.constant 0 : index
    %c0_14 = arith.constant 0 : index
    %29 = vector.load %arg3[%c0_12, %c0_13, %c0_14] : memref<3x128x128xf32, #tpu.memory_space<vmem>>, vector<1x128x128xf32>
    %30 = vector.shape_cast %29 : vector<1x128x128xf32> to vector<128x128xf32>
    %cst_15 = arith.constant dense<0.000000e+00> : vector<10x128xf32>
    %31 = tpu.matmul %28, %30, %cst_15 {dimension_numbers = #tpu.dot_dimension_numbers<[1], [0], [0], [1], [0, 0, 1, 1], [], []>} : vector<10x128xf32>, vector<128x128xf32>, vector<10x128xf32> -> vector<10x128xf32>
    %32 = arith.addf %27, %31 : vector<10x128xf32>
    %33 = vector.extract_strided_slice %26 {offsets = [1, 0], sizes = [10, 128], strides = [1, 1]} : vector<12x128xf32> to vector<10x128xf32>
    %c1 = arith.constant 1 : index
    %c0_16 = arith.constant 0 : index
    %c0_17 = arith.constant 0 : index
    %34 = vector.load %arg3[%c1, %c0_16, %c0_17] : memref<3x128x128xf32, #tpu.memory_space<vmem>>, vector<1x128x128xf32>
    %35 = vector.shape_cast %34 : vector<1x128x128xf32> to vector<128x128xf32>
    %cst_18 = arith.constant dense<0.000000e+00> : vector<10x128xf32>
    %36 = tpu.matmul %33, %35, %cst_18 {dimension_numbers = #tpu.dot_dimension_numbers<[1], [0], [0], [1], [0, 0, 1, 1], [], []>} : vector<10x128xf32>, vector<128x128xf32>, vector<10x128xf32> -> vector<10x128xf32>
    %37 = arith.addf %32, %36 : vector<10x128xf32>
    %38 = vector.extract_strided_slice %26 {offsets = [2, 0], sizes = [10, 128], strides = [1, 1]} : vector<12x128xf32> to vector<10x128xf32>
    %c2 = arith.constant 2 : index
    %c0_19 = arith.constant 0 : index
    %c0_20 = arith.constant 0 : index
    %39 = vector.load %arg3[%c2, %c0_19, %c0_20] : memref<3x128x128xf32, #tpu.memory_space<vmem>>, vector<1x128x128xf32>
    %40 = vector.shape_cast %39 : vector<1x128x128xf32> to vector<128x128xf32>
    %cst_21 = arith.constant dense<0.000000e+00> : vector<10x128xf32>
    %41 = tpu.matmul %38, %40, %cst_21 {dimension_numbers = #tpu.dot_dimension_numbers<[1], [0], [0], [1], [0, 0, 1, 1], [], []>} : vector<10x128xf32>, vector<128x128xf32>, vector<10x128xf32> -> vector<10x128xf32>
    %42 = arith.addf %37, %41 : vector<10x128xf32>
    %c0_22 = arith.constant 0 : index
    %c0_23 = arith.constant 0 : index
    %43 = vector.load %arg4[%c0_22, %c0_23] : memref<1x128xf32, #tpu.memory_space<vmem>>, vector<1x128xf32>
    %44 = vector.broadcast %43 : vector<1x128xf32> to vector<10x128xf32>
    %45 = arith.addf %42, %44 : vector<10x128xf32>
    %cst_24 = arith.constant 0.000000e+00 : f32
    %46 = vector.broadcast %cst_24 : f32 to vector<10x128xf32>
    %47 = arith.maximumf %45, %46 : vector<10x128xf32>
    %48 = tpu.iota {dimensions = array<i32: 0>} : vector<10x128xi32>
    %c8_i32_25 = arith.constant 8 : i32
    %49 = arith.muli %arg1, %c8_i32_25 : i32
    %c1_i32_26 = arith.constant 1 : i32
    %50 = arith.subi %49, %c1_i32_26 : i32
    %51 = vector.broadcast %50 : i32 to vector<10x128xi32>
    %52 = arith.addi %48, %51 : vector<10x128xi32>
    %c0_i32_27 = arith.constant 0 : i32
    %53 = vector.broadcast %c0_i32_27 : i32 to vector<10x128xi32>
    %54 = arith.cmpi sge, %52, %53 : vector<10x128xi32>
    %c16_i32 = arith.constant 16 : i32
    %55 = vector.broadcast %c16_i32 : i32 to vector<10x128xi32>
    %56 = arith.cmpi slt, %52, %55 : vector<10x128xi32>
    %57 = arith.andi %54, %56 : vector<10x128xi1>
    %cst_28 = arith.constant 0.000000e+00 : f32
    %58 = vector.broadcast %cst_28 : f32 to vector<10x128xf32>
    %59 = arith.select %57, %47, %58 : vector<10x128xi1>, vector<10x128xf32>
    %cst_29 = arith.constant 0.000000e+00 : f32
    %60 = vector.broadcast %cst_29 : f32 to vector<8x128xf32>
    %61 = vector.extract_strided_slice %59 {offsets = [0, 0], sizes = [8, 128], strides = [1, 1]} : vector<10x128xf32> to vector<8x128xf32>
    %c0_30 = arith.constant 0 : index
    %c0_31 = arith.constant 0 : index
    %c0_32 = arith.constant 0 : index
    %62 = vector.load %arg5[%c0_30, %c0_31, %c0_32] : memref<3x128x128xf32, #tpu.memory_space<vmem>>, vector<1x128x128xf32>
    %63 = vector.shape_cast %62 : vector<1x128x128xf32> to vector<128x128xf32>
    %cst_33 = arith.constant dense<0.000000e+00> : vector<8x128xf32>
    %64 = tpu.matmul %61, %63, %cst_33 {dimension_numbers = #tpu.dot_dimension_numbers<[1], [0], [0], [1], [0, 0, 1, 1], [], []>} : vector<8x128xf32>, vector<128x128xf32>, vector<8x128xf32> -> vector<8x128xf32>
    %65 = arith.addf %60, %64 : vector<8x128xf32>
    %66 = vector.extract_strided_slice %59 {offsets = [1, 0], sizes = [8, 128], strides = [1, 1]} : vector<10x128xf32> to vector<8x128xf32>
    %c1_34 = arith.constant 1 : index
    %c0_35 = arith.constant 0 : index
    %c0_36 = arith.constant 0 : index
    %67 = vector.load %arg5[%c1_34, %c0_35, %c0_36] : memref<3x128x128xf32, #tpu.memory_space<vmem>>, vector<1x128x128xf32>
    %68 = vector.shape_cast %67 : vector<1x128x128xf32> to vector<128x128xf32>
    %cst_37 = arith.constant dense<0.000000e+00> : vector<8x128xf32>
    %69 = tpu.matmul %66, %68, %cst_37 {dimension_numbers = #tpu.dot_dimension_numbers<[1], [0], [0], [1], [0, 0, 1, 1], [], []>} : vector<8x128xf32>, vector<128x128xf32>, vector<8x128xf32> -> vector<8x128xf32>
    %70 = arith.addf %65, %69 : vector<8x128xf32>
    %71 = vector.extract_strided_slice %59 {offsets = [2, 0], sizes = [8, 128], strides = [1, 1]} : vector<10x128xf32> to vector<8x128xf32>
    %c2_38 = arith.constant 2 : index
    %c0_39 = arith.constant 0 : index
    %c0_40 = arith.constant 0 : index
    %72 = vector.load %arg5[%c2_38, %c0_39, %c0_40] : memref<3x128x128xf32, #tpu.memory_space<vmem>>, vector<1x128x128xf32>
    %73 = vector.shape_cast %72 : vector<1x128x128xf32> to vector<128x128xf32>
    %cst_41 = arith.constant dense<0.000000e+00> : vector<8x128xf32>
    %74 = tpu.matmul %71, %73, %cst_41 {dimension_numbers = #tpu.dot_dimension_numbers<[1], [0], [0], [1], [0, 0, 1, 1], [], []>} : vector<8x128xf32>, vector<128x128xf32>, vector<8x128xf32> -> vector<8x128xf32>
    %75 = arith.addf %70, %74 : vector<8x128xf32>
    %c0_42 = arith.constant 0 : index
    %c0_43 = arith.constant 0 : index
    %76 = vector.load %arg6[%c0_42, %c0_43] : memref<1x128xf32, #tpu.memory_space<vmem>>, vector<1x128xf32>
    %77 = vector.broadcast %76 : vector<1x128xf32> to vector<8x128xf32>
    %78 = arith.addf %75, %77 : vector<8x128xf32>
    %c0_44 = arith.constant 0 : index
    %c0_45 = arith.constant 0 : index
    %c0_46 = arith.constant 0 : index
    %79 = vector.load %arg7[%c0_44, %c0_45, %c0_46] : memref<1x8x128xf32, #tpu.memory_space<vmem>>, vector<1x8x128xf32>
    %80 = vector.shape_cast %79 : vector<1x8x128xf32> to vector<8x128xf32>
    %81 = vector.shape_cast %78 : vector<8x128xf32> to vector<1x8x128xf32>
    tpu.vector_store %arg7[%c0_44, %c0_45, %c0_46], %81 {strides = array<i32>} : memref<1x8x128xf32, #tpu.memory_space<vmem>>, vector<1x8x128xf32>,
    return
  }
  func.func @transform_1(%arg0: i32, %arg1: i32) -> (i32, i32, i32) {
    %c0_i32 = arith.constant 0 : i32
    %c0_i32_0 = arith.constant 0 : i32
    %c0_i32_1 = arith.constant 0 : i32
    %c0_i32_2 = arith.constant 0 : i32
    return %c0_i32, %c0_i32_0, %c0_i32_1 : i32, i32, i32
  }
  func.func @transform_2(%arg0: i32, %arg1: i32) -> (i32, i32) {
    %c0_i32 = arith.constant 0 : i32
    %c0_i32_0 = arith.constant 0 : i32
    %c0_i32_1 = arith.constant 0 : i32
    return %c0_i32, %c0_i32_0 : i32, i32
  }
  func.func @transform_3(%arg0: i32, %arg1: i32) -> (i32, i32, i32) {
    %c0_i32 = arith.constant 0 : i32
    %c0_i32_0 = arith.constant 0 : i32
    %c0_i32_1 = arith.constant 0 : i32
    %c0_i32_2 = arith.constant 0 : i32
    return %c0_i32, %c0_i32_0, %c0_i32_1 : i32, i32, i32
  }
  func.func @transform_4(%arg0: i32, %arg1: i32) -> (i32, i32) {
    %c0_i32 = arith.constant 0 : i32
    %c0_i32_0 = arith.constant 0 : i32
    %c0_i32_1 = arith.constant 0 : i32
    return %c0_i32, %c0_i32_0 : i32, i32
  }
  func.func @transform_5(%arg0: i32, %arg1: i32) -> (i32, i32, i32) {
    %c0_i32 = arith.constant 0 : i32
    %c0_i32_0 = arith.constant 0 : i32
    return %arg0, %arg1, %c0_i32 : i32, i32, i32
  }
}

</mosaic_0001>

<bundles_post_ra>
// kernel: tpu_custom_call.1
= control target key start
LH: loop header
LB: loop body
LE: loop exit
PB: predicated region body
PF: predicated region fallthrough
CT: control target
= control target key end

     0   :  { %10 = vsyncpa [#allocation5], 0  ;;  %s1270_s0 = inlined_call_operand.vmem [shape: f32[2,20,128], index: 0, kind: input, shape index: {}]   ;;  %s1271_s1 = inlined_call_operand.hbm [shape: f32[3,128,128], index: 1, kind: input, shape index: {}]   ;;  %s1272_s2 = inlined_call_operand.vmem [shape: f32[1,128], index: 2, kind: input, shape index: {}]   ;;  %s1273_s3 = inlined_call_operand.hbm [shape: f32[3,128,128], index: 3, kind: input, shape index: {}]   ;;  %s1274_s4 = inlined_call_operand.vmem [shape: f32[1,128], index: 4, kind: input, shape index: {}]   ;;  %s1275_s5 = inlined_call_operand.hbm [shape: f32[2,16,128], index: 5, kind: output, shape index: {}]  }
   0x1   :  { %11 = vsyncpa [#allocation8], 0 }
   0x2   :  { %12 = vsyncpa [#allocation6], 0 }
   0x3   :  { %14 = vsyncpa [#allocation6 + $0x1], 0  ;;  %s1080_s18 = smov 0   ;;  %s1082_s19 = smov 0  }
   0x4   :  { %s1084_s20 = smov 0   ;;  %s1086_s21 = smov 0  }
   0x5   :  { %s1088_s22 = smov 0   ;;  %s1090_s23 = smov 0  }
   0x6   :  { %s1092_s24 = smov 0   ;;  %s1094_s25 = smov 0  }
   0x7 LB: > { %1280 = sst [smem:[#allocation16_spill]] %s1040_s24  ;;  %s753_s26 = sadd.s32 4294967295, %s1044_s25   ;;  %s1044_s25 = sphi %s1094_s25, %s20_s25   ;;  %s1040_s24 = sphi %s1092_s24, %s1292_s24   ;;  %s1036_s23 = sphi %s1090_s23, %s1297_s23   ;;  %s1032_s22 = sphi %s1088_s22, %s1290_s22   ;;  %s1028_s21 = sphi %s1086_s21, %s1296_s21   ;;  %s1024_s20 = sphi %s1084_s20, %s1295_s20   ;;  %s1020_s19 = sphi %s1082_s19, %s1294_s19   ;;  %s1016_s18 = sphi %s1080_s18, %s1293_s18  }
   0x8   : > { %s754_s27 = sadd.s32 4294967294, %s1044_s25   ;;  %s29_s28 = sadd.s32 1, %s1036_s23 }
   0x9   : > { %s32_s29 = sadd.s32 1, %s1040_s24  ;;  %p30_p0 = scmp.ge.s32.totalorder %s29_s28, 2 }
   0xa   : > { %s125_s30 = sadd.s32 1, %s1024_s20  ;;  %p135_p1 = scmp.ne.s32.totalorder %s1024_s20, %s1020_s19 }
   0xb   : > { %p136_p2 = scmp.eq.s32.totalorder %s753_s26, 3  ;;  %s1299_s28 = smov (%p30_p0, %s29_s28), 0 }
   0xc   : > { %1281 = sst [smem:[#allocation17_spill]] %s1299_s28  ;;  %s1301_s29 = smov (!%p30_p0, %s32_s29), %s1040_s24 }
   0xd   : > { %s121_s6 = ssub.s32 %s1036_s23, %s1299_s28  ;;  %p1132_p3 = por %p136_p2, %p135_p1 }
   0xe   : > { %p34_p4 = scmp.ge.s32.totalorder %s1301_s29, 2  ;;  %p141_p5 = scmp.ne.s32.totalorder %s1020_s19, %s1016_s18 }
   0xf   : > { %p142_p6 = scmp.eq.s32.totalorder %s754_s27, 3  ;;  %p755_p7 = scmp.ge.s32.totalorder %s1044_s25, 1 }
  0x10   : > { %s1303_s29 = smov (%p34_p4, %s1301_s29), 0  ;;  %p149_p9 = scmp.lt.s32.totalorder %s1044_s25, 5 }
  0x11   : > { %1283 = sst [smem:[#allocation18_spill]] %s1303_s29  ;;  %p1141_p8 = por %p142_p6, %p141_p5 }
  0x12   : > { %s120_s9 = ssub.s32 %s1040_s24, %s1303_s29  ;;  %p1148_p10 = pnand %p755_p7, %p149_p9 }
  0x13   : > { %s122_s10 = sor.u32 %s121_s6, %s120_s9  ;;  %p1152_p12 = scmp.eq.s32.totalorder %s753_s26, 0 }
  0x14   : > { %p123_p11 = scmp.eq.s32.totalorder %s122_s10, 0  ;;  %p794_p13 = pneg %p1148_p10 }
  0x15   : > { %s160_s15 = sshll.u32 %s1271_s1, 4  ;;  %s1046_s17 = smov [#allocation4]   ;;  %s161_s15 = int_to_ptr.hbm [resolvable:$true] %s160_s15 }
  0x16   : > { %s1162_s16 = scalar_select %p123_p11, %s1024_s20, %s125_s30  }
  0x17   : > { %s162_s27 = sshll.u32 %s1046_s17, 4  ;;  %p795_p0 = pnand %p1152_p12, %p794_p13  ;;  %s163_s27 = int_to_ptr.vmem [resolvable:$true] %s162_s27 }
  0x18   : > { %s1047_s6 = smov 128   ;;  %s1048_s26 = smov 8  }
  0x19   : > { %797 = dma.hbm_to_vmem [thread:$0]  (!%p795_p0), %s161_s15, 6144, %s163_s27, [#allocation5], %s1047_s6, %s1047_s6, %s1048_s26  }
  0x1a   : > { %s177_s29 = sshll.u32 %s1273_s3, 4  ;;  %s1049_s28 = smov [#allocation7]   ;;  %s178_s29 = int_to_ptr.hbm [resolvable:$true] %s177_s29 }
  0x1b   : > { %s179_s24 = sshll.u32 %s1049_s28, 4  ;;  %198 = sbr.rel (%p1148_p10) target bundleno = 386 (0x182), region = 36  ;;  %s180_s24 = int_to_ptr.vmem [resolvable:$true] %s179_s24 }
  0x1c   : > { %800 = dma.hbm_to_vmem [thread:$0]  (!%p795_p0), %s178_s29, 6144, %s180_s24, [#allocation8], %s1047_s6, %s1047_s6, %s1048_s26  }
  0x20   : > { %1001 = dma.done.wait (%p1152_p12), [#allocation5], 6144  }
  0x21   : > { %1003 = vsyncadd (%p1152_p12), [#allocation5], 4294961152 }
  0x22   : > { %1005 = dma.done.wait (%p1152_p12), [#allocation8], 6144  }
  0x23   : > { %1007 = vsyncadd (%p1152_p12), [#allocation8], 4294961152  ;;  %s1279_s24 = sand.u32 1, %s1020_s19   ;;  %p225_p1 = scmp.lt.s32.totalorder %s1028_s21, 0 }
  0x24   : > { %s1183_s28 = sshll.u32 %s1279_s24, 3  ;;  %s226_s29 = ssub.s32 0, %s1028_s21 }
  0x25   : > { %s762_s30 = smin.u32 %s1028_s21, %s226_s29  ;;  %p765_p4 = scmp.ne.s32.totalorder %s1028_s21, 0 }
  0x26   : > { %s228_s11 = sand.u32 1, %s762_s30   ;;  %s241_s15 = smul.u32 (!%p765_p4), 24, %s1032_s22 }
  0x27   : > { %s229_s13 = ssub.s32 0, %s228_s11  ;;  %240 = sbr.rel (%p765_p4) target bundleno = 48 (0x30), region = 48 }
  0x28   : > { %s1305_s13 = smov (!%p225_p1, %s229_s13), %s228_s11  ;;  %s242_s6 = scalar_lea.vmem (!%p765_p4), %s1270_s0, %s241_s15 }
  0x29   : > { %p764_p2 = scmp.lt.s32.totalorder %s1305_s13, 0  ;;  %s235_s14 = sadd.s32 2, %s1305_s13 }
  0x2b   : > { %s1307_s14 = smov (!%p764_p2, %s235_s14), %s1305_s13 }
  0x2c   : > { %v255_v0 = vld [vmem:[%s242_s6] sm:$0xff]  ;;  %v766_v1 = vld [vmem:[%s242_s6 + $0x8] sm:$0xf] }
  0x2d   : > { %256 = vst [vmem:[#allocation2] sm:$0xff] %v255_v0 }
  0x2e   : > { %268 = vst [vmem:[#allocation2 + $0x8] sm:$0xf] %v766_v1 }
  0x2f   : > { %272 = vsyncadd [#allocation3], 192 }
  0x30 PF: > { %s273_s26 = sadd.s32 1, %s1028_s21 }
  0x31   : > { %p767_p5 = scmp.ge.s32.totalorder %s273_s26, 2 }
  0x32   : > { %s278_s9 = ssub.s32 (!%p767_p5), 1, %s1307_s14  ;;  %s768_s10 = sshll.u32 (!%p767_p5), %s1028_s21, 3 }
  0x33   : > { %277 = sbr.rel (%p767_p5) target bundleno = 60 (0x3c), region = 74  ;;  %s769_s30 = sshll.u32 (!%p767_p5), %s278_s9, 4 }
  0x34   : > { %s672_s29 = smul.u32 (!%p767_p5), 24, %s1032_s22  ;;  %s284_s27 = scalar_lea.vmem (!%p767_p5), [#allocation2], %s769_s30 }
  0x35   : > { %s285_s6 = scalar_lea.sflag (!%p767_p5), [#allocation3], %s278_s9 }
  0x36   : > { %s673_s11 = sadd.s32 (!%p767_p5), %s768_s10, %s672_s29 }
  0x37   : > { %s674_s17 = scalar_lea.vmem (!%p767_p5), %s1270_s0, %s673_s11 }
  0x38   : > { %v770_v2 = vld [vmem:[%s674_s17 + $0x8] sm:$0xff]  ;;  %v771_v3 = vld [vmem:[%s674_s17 + $0x10] sm:$0xf] }
  0x39   : > { %299 = vst [vmem:[%s284_s27] sm:$0xff] %v770_v2 }
  0x3a   : > { %772 = vst [vmem:[%s284_s27 + $0x8] sm:$0xf] %v771_v3 }
  0x3b   : > { %315 = vsyncadd %s285_s6, 192 }
  0x3c PF: > { %s773_s26 = sshll.u32 %s1028_s21, 3  ;;  %s774_s24 = sshll.u32 %s1307_s14, 4 }
  0x3d   : > { %s1204_s12 = scalar_lea.vmem [#allocation2], %s774_s24  ;;  %s319_s10 = scalar_lea.sflag [#allocation3], %s1307_s14 }
  0x3e   : > { %1008 = dma.done.wait %s319_s10, 192 }
  0x3f   : > { %1009 = vsyncadd %s319_s10, 4294967104  ;;  %v428_v4 = vld [vmem:[#allocation4 + $0x178] sm:$0xff]  ;;  %v427_v5 = vld [vmem:[#allocation4 + $0x170] sm:$0xff]  ;;  %vm429_vm0 = vcmask 1045504   ;;  %vm360_vm1 = vcmask 1046528   ;;  %s775_s24 = sadd.s32 4294967295, %s773_s26 }
  0x40   : > { %v357_v6 = vld [vmem:[#allocation4 + $0xf8] sm:$0xff]  ;;  %435 = vmatpush.msra.mxu2 %v428_v4  ;;  %v356_v8 = vld [vmem:[#allocation4 + $0xf0] sm:$0xff]  ;;  %v426_v9 = vld [vmem:[#allocation4 + $0x168] sm:$0xff]  ;;  %s778_s9 = sshll.u32 %s1032_s22, 1  ;;  %s1287_s6 = scalar_lea.vmem [#allocation9], %s1183_s28 }
  0x41   : > { %366 = vmatpush.msra.mxu0 %v357_v6  ;;  %v340_v7 = vld [vmem:[#allocation4 + $0x78] sm:$0xff]  ;;  %v339_v10 = vld [vmem:[#allocation4 + $0x70] sm:$0xff]  ;;  %v355_v11 = vld [vmem:[#allocation4 + $0xe8] sm:$0xff]  ;;  %s621_s29 = sadd.s32 %s1028_s21, %s778_s9  ;;  %s625_s26 = sshll.u32 %s1287_s6, 4  ;;  %s626_s26 = int_to_ptr.vmem [resolvable:$true] %s625_s26 }
  0x42   : > { %389 = vmatpush.msra.mxu1 %v340_v7  ;;  %436 = vmatpush.msra.mxu2 %v427_v5  ;;  %v338_v12 = vld [vmem:[#allocation4 + $0x68] sm:$0xff]  ;;  %v425_v13 = vld [vmem:[#allocation4 + $0x160] sm:$0xff]  ;;  %v424_v16 = vld [vmem:[#allocation4 + $0x158] sm:$0xff]  ;;  %s779_s30 = sshll.u32 %s621_s29, 3  ;;  %s1288_s21 = smov %s1287_s6 }
  0x43   : > { %367 = vmatpush.msra.mxu0 %v356_v8  ;;  %v354_v14 = vld [vmem:[#allocation4 + $0xe0] sm:$0xff]  ;;  %v353_v17 = vld [vmem:[#allocation4 + $0xd8] sm:$0xff]  ;;  %v423_v19 = vld [vmem:[#allocation4 + $0x150] sm:$0xff]  ;;  %s623_s15 = scalar_lea.hbm %s1275_s5, %s779_s30  ;;  %s1289_s22 = sand.u32 1, %s1020_s19  }
  0x44   : > { %390 = vmatpush.msra.mxu1 %v339_v10  ;;  %437 = vmatpush.msra.mxu2 %v426_v9  ;;  %v337_v15 = vld [vmem:[#allocation4 + $0x60] sm:$0xff]  ;;  %v336_v18 = vld [vmem:[#allocation4 + $0x58] sm:$0xff]  ;;  %v352_v20 = vld [vmem:[#allocation4 + $0xd0] sm:$0xff]  ;;  %s627_s10 = sshll.u32 %s623_s15, 4  ;;  %s960_s30 = scalar_lea.hbm %s1275_s5, 32  ;;  %s628_s10 = int_to_ptr.hbm [resolvable:$true] %s627_s10 }
  0x45   : > { %368 = vmatpush.msra.mxu0 %v355_v11  ;;  %v335_v21 = vld [vmem:[#allocation4 + $0x50] sm:$0xff]  ;;  %v422_v22 = vld [vmem:[#allocation4 + $0x148] sm:$0xff]  ;;  %v421_v25 = vld [vmem:[#allocation4 + $0x140] sm:$0xff]  ;;  %s954_s14 = sshra.s32 %s628_s10, 4  ;;  %s955_s14 = int_to_ptr.hbm [resolvable:$true] %s954_s14 }
  0x46   : > { %391 = vmatpush.msra.mxu1 %v338_v12  ;;  %438 = vmatpush.msra.mxu2 %v425_v13  ;;  %v351_v23 = vld [vmem:[#allocation4 + $0xc8] sm:$0xff]  ;;  %v350_v26 = vld [vmem:[#allocation4 + $0xc0] sm:$0xff]  ;;  %v420_v28 = vld [vmem:[#allocation4 + $0x138] sm:$0xff]  ;;  %p961_p10 = scmp.lt.s32.totalorder %s955_s14, %s1275_s5 }
  0x47   : > { %369 = vmatpush.msra.mxu0 %v354_v14  ;;  %v334_v24 = vld [vmem:[#allocation4 + $0x48] sm:$0xff]  ;;  %v333_v27 = vld [vmem:[#allocation4 + $0x40] sm:$0xff]  ;;  %v349_v29 = vld [vmem:[#allocation4 + $0xb8] sm:$0xff] }
  0x48   : > { %392 = vmatpush.msra.mxu1 %v337_v15  ;;  %439 = vmatpush.msra.mxu2 %v424_v16  ;;  %v332_v30 = vld [vmem:[#allocation4 + $0x38] sm:$0xff]  ;;  %v419_v31 = vld [vmem:[#allocation4 + $0x130] sm:$0xff]  ;;  %v418_v34 = vld [vmem:[#allocation4 + $0x128] sm:$0xff] }
  0x49   : > { %370 = vmatpush.msra.mxu0 %v353_v17  ;;  %v348_v32 = vld [vmem:[#allocation4 + $0xb0] sm:$0xff]  ;;  %v347_v35 = vld [vmem:[#allocation4 + $0xa8] sm:$0xff]  ;;  %v515_v36 = vld [vmem:[#allocation7 + $0xf8] sm:$0xff] }
  0x4a   : > { %393 = vmatpush.msra.mxu1 %v336_v18  ;;  %440 = vmatpush.msra.mxu2 %v423_v19  ;;  %v331_v33 = vld [vmem:[#allocation4 + $0x30] sm:$0xff]  ;;  %v330_v37 = vld [vmem:[#allocation4 + $0x28] sm:$0xff]  ;;  %v417_v39 = vld [vmem:[#allocation4 + $0x120] sm:$0xff] }
  0x4b   : > { %371 = vmatpush.msra.mxu0 %v352_v20  ;;  %v514_v38 = vld [vmem:[#allocation7 + $0xf0] sm:$0xff]  ;;  %v346_v40 = vld [vmem:[#allocation4 + $0xa0] sm:$0xff]  ;;  %522 = vmatpush.msra.mxu3 %v515_v36  ;;  %v416_v41 = vld [vmem:[#allocation4 + $0x118] sm:$0xff] }
  0x4c   : > { %394 = vmatpush.msra.mxu1 %v335_v21  ;;  %441 = vmatpush.msra.mxu2 %v422_v22  ;;  %v329_v42 = vld [vmem:[#allocation4 + $0x20] sm:$0xff]  ;;  %v513_v43 = vld [vmem:[#allocation7 + $0xe8] sm:$0xff]  ;;  %v345_v44 = vld [vmem:[#allocation4 + $0x98] sm:$0xff] }
  0x4d   : > { %372 = vmatpush.msra.mxu0 %v351_v23  ;;  %v323_v45 = vld [vmem:[%s1204_s12] sm:$0xff]  ;;  %v324_v46 = vld [vmem:[%s1204_s12 + $0x8] sm:$0xf]  ;;  %523 = vmatpush.msra.mxu3 %v514_v38  ;;  %v328_v47 = vld [vmem:[#allocation4 + $0x18] sm:$0xff]  ;;  %s956_s12 = scalar_lea.hbm %s955_s14, 8 }
  0x4e   : > { %395 = vmatpush.msra.mxu1 %v334_v24  ;;  %442 = vmatpush.msra.mxu2 %v421_v25  ;;  %v512_v48 = vld [vmem:[#allocation7 + $0xe0] sm:$0xff]  ;;  %v415_v49 = vld [vmem:[#allocation4 + $0x110] sm:$0xff]  ;;  %v430_v52 = vrot.slane %v323_v45, 2  ;;  %v431_v53 = vrot.slane %v324_v46, 2  ;;  %v511_v54 = vld [vmem:[#allocation7 + $0xd8] sm:$0xff]  ;;  %v361_v57 = vrot.slane %v323_v45, 1  ;;  %p957_p6 = scmp.ne.s32.totalorder %s955_s14, %s956_s12  ;;  %p962_p11 = scmp.lt.s32.totalorder %s960_s30, %s956_s12 }
  0x4f   : > { %373 = vmatpush.msra.mxu0 %v350_v26  ;;  %v344_v50 = vld [vmem:[#allocation4 + $0x90] sm:$0xff]  ;;  %524 = vmatpush.msra.mxu3 %v513_v43  ;;  %v414_v55 = vld [vmem:[#allocation4 + $0x108] sm:$0xff]  ;;  %v362_v58 = vrot.slane %v324_v46, 1  ;;  %v413_v60 = vld [vmem:[#allocation4 + $0x100] sm:$0xff] }
  0x50   : > { %396 = vmatpush.msra.mxu1 %v333_v27  ;;  %443 = vmatpush.msra.mxu2 %v420_v28  ;;  %v327_v51 = vld [vmem:[#allocation4 + $0x10] sm:$0xff]  ;;  %v343_v56 = vld [vmem:[#allocation4 + $0x88] sm:$0xff]  ;;  %v342_v61 = vld [vmem:[#allocation4 + $0x80] sm:$0xff]  ;;  %v432_v62 = vsel %vm429_vm0, %v430_v52, %v431_v53  ;;  %p958_p7 = pnand %p957_p6, %p1132_p3  ;;  %p963_p12 = por %p962_p11, %p961_p10 }
  0x51   : > { %374 = vmatpush.msra.mxu0 %v349_v29  ;;  %525 = vmatpush.msra.mxu3 %v512_v48  ;;  %v326_v59 = vld [vmem:[#allocation4 + $0x8] sm:$0xff]  ;;  %v325_v63 = vld [vmem:[#allocation4] sm:$0xff]  ;;  %v363_v0 = vsel %vm360_vm1, %v361_v57, %v362_v58  ;;  %v498_v1 = vld [vmem:[#allocation7 + $0x78] sm:$0xff] }
  0x52   : > { %397 = vmatpush.msra.mxu1 %v332_v30  ;;  %444 = vmatpush.msra.mxu2 %v419_v31  ;;  %v578_v2 = vld [vmem:[#allocation7 + $0x178] sm:$0xff]  ;;  %v497_v3 = vld [vmem:[#allocation7 + $0x70] sm:$0xff]  ;;  %v496_v5 = vld [vmem:[#allocation7 + $0x68] sm:$0xff]  ;;  %p959_p9 = pneg %p958_p7 }
  0x53   : > { %375 = vmatpush.msra.mxu0 %v348_v32  ;;  %526 = vmatpush.msra.mxu3 %v511_v54  ;;  %v577_v4 = vld [vmem:[#allocation7 + $0x170] sm:$0xff]  ;;  %v576_v6 = vld [vmem:[#allocation7 + $0x168] sm:$0xff]  ;;  %v495_v7 = vld [vmem:[#allocation7 + $0x60] sm:$0xff] }
  0x54   : > { %398 = vmatpush.msra.mxu1 %v331_v33  ;;  %445 = vmatpush.msra.mxu2 %v418_v34  ;;  %v494_v8 = vld [vmem:[#allocation7 + $0x58] sm:$0xff]  ;;  %v575_v9 = vld [vmem:[#allocation7 + $0x160] sm:$0xff]  ;;  %v493_v10 = vld [vmem:[#allocation7 + $0x50] sm:$0xff]  ;;  %p964_p13 = pnand %p963_p12, %p959_p9 }
  0x55   : > { %376 = vmatpush.msra.mxu0 %v347_v35  ;;  %v574_v11 = vld [vmem:[#allocation7 + $0x158] sm:$0xff]  ;;  %v492_v12 = vld [vmem:[#allocation7 + $0x48] sm:$0xff]  ;;  %v491_v13 = vld [vmem:[#allocation7 + $0x40] sm:$0xff] }
  0x56   : > { %399 = vmatpush.msra.mxu1 %v330_v37  ;;  %446 = vmatpush.msra.mxu2 %v417_v39  ;;  %v490_v14 = vld [vmem:[#allocation7 + $0x38] sm:$0xff]  ;;  %v489_v15 = vld [vmem:[#allocation7 + $0x30] sm:$0xff]  ;;  %v488_v16 = vld [vmem:[#allocation7 + $0x28] sm:$0xff] }
  0x57   : > { %377 = vmatpush.msra.mxu0 %v346_v40  ;;  %v510_v17 = vld [vmem:[#allocation7 + $0xd0] sm:$0xff]  ;;  %v487_v18 = vld [vmem:[#allocation7 + $0x20] sm:$0xff]  ;;  %v509_v20 = vld [vmem:[#allocation7 + $0xc8] sm:$0xff] }
  0x58   : > { %400 = vmatpush.msra.mxu1 %v329_v42  ;;  %447 = vmatpush.msra.mxu2 %v416_v41  ;;  %v573_v19 = vld [vmem:[#allocation7 + $0x150] sm:$0xff]  ;;  %v486_v21 = vld [vmem:[#allocation7 + $0x18] sm:$0xff]  ;;  %v572_v22 = vld [vmem:[#allocation7 + $0x148] sm:$0xff] }
  0x59   : > { %378 = vmatpush.msra.mxu0 %v345_v44  ;;  %527 = vmatpush.msra.mxu3 %v510_v17  ;;  %v508_v23 = vld [vmem:[#allocation7 + $0xc0] sm:$0xff]  ;;  %v485_v24 = vld [vmem:[#allocation7 + $0x10] sm:$0xff]  ;;  %v507_v26 = vld [vmem:[#allocation7 + $0xb8] sm:$0xff]  ;;  %v468_v44 = vlaneseq }
  0x5a   : > { %401 = vmatpush.msra.mxu1 %v328_v47  ;;  %448 = vmatpush.msra.mxu2 %v415_v49  ;;  %v571_v25 = vld [vmem:[#allocation7 + $0x140] sm:$0xff]  ;;  %v484_v27 = vld [vmem:[#allocation7 + $0x8] sm:$0xff]  ;;  %v570_v28 = vld [vmem:[#allocation7 + $0x138] sm:$0xff] }
  0x5b   : > { %379 = vmatpush.msra.mxu0 %v344_v50  ;;  %528 = vmatpush.msra.mxu3 %v509_v20  ;;  %v506_v29 = vld [vmem:[#allocation7 + $0xb0] sm:$0xff]  ;;  %v483_v30 = vld [vmem:[#allocation7] sm:$0xff]  ;;  %v505_v32 = vld [vmem:[#allocation7 + $0xa8] sm:$0xff] }
  0x5c   : > { %402 = vmatpush.msra.mxu1 %v327_v51  ;;  %449 = vmatpush.msra.mxu2 %v414_v55  ;;  %v569_v31 = vld [vmem:[#allocation7 + $0x130] sm:$0xff]  ;;  %v568_v33 = vld [vmem:[#allocation7 + $0x128] sm:$0xff]  ;;  %v504_v34 = vld [vmem:[#allocation7 + $0xa0] sm:$0xff] }
  0x5d   : > { %380 = vmatpush.msra.mxu0 %v343_v56  ;;  %529 = vmatpush.msra.mxu3 %v508_v23  ;;  %v567_v35 = vld [vmem:[#allocation7 + $0x120] sm:$0xff]  ;;  %v503_v36 = vld [vmem:[#allocation7 + $0x98] sm:$0xff]  ;;  %v502_v38 = vld [vmem:[#allocation7 + $0x90] sm:$0xff] }
  0x5e   : > { %403 = vmatpush.msra.mxu1 %v326_v59  ;;  %450 = vmatpush.msra.mxu2 %v413_v60  ;;  %v566_v37 = vld [vmem:[#allocation7 + $0x118] sm:$0xff]  ;;  %v565_v39 = vld [vmem:[#allocation7 + $0x110] sm:$0xff]  ;;  %v501_v40 = vld [vmem:[#allocation7 + $0x88] sm:$0xff] }
  0x5f   : > { %381 = vmatpush.msra.mxu0 %v342_v61  ;;  %451 = vmatmul.f32.vlgmr.msra.gmra.mxu2 %v432_v62  ;;  %v564_v41 = vld [vmem:[#allocation7 + $0x108] sm:$0xff]  ;;  %v500_v42 = vld [vmem:[#allocation7 + $0x80] sm:$0xff] }
  0x60   : > { %404 = vmatpush.msra.mxu1 %v325_v63  ;;  %382 = vmatmul.f32.vlgmr.msra.gmra.mxu0 %v363_v0  ;;  %v563_v43 = vld [vmem:[#allocation7 + $0x100] sm:$0xff] }
  0x61   : > { %405 = vmatmul.f32.vlgmr.msra.gmra.mxu1 %v323_v45  ;;  %542 = vmatpush.msrb.mxu0 %v498_v1  ;;  %v469_v45 = vshrl.u32 %v468_v44, 7  ;;  %v878_v51 = vld [vmem:[%s1272_s2] ss:$0 sm:$0xff] }
  0x62   : > { %583 = vmatpush.msrb.mxu1 %v578_v2  ;;  %530 = vmatpush.msra.mxu3 %v507_v26 }
  0x63   : > { %543 = vmatpush.msrb.mxu0 %v497_v3  ;;  %v470_v54 = vadd.s32 8, %v469_v45 }
  0x64   : > { %584 = vmatpush.msrb.mxu1 %v577_v4  ;;  %531 = vmatpush.msra.mxu3 %v506_v29 }
  0x65   : > { %544 = vmatpush.msrb.mxu0 %v496_v5 }
  0x66   : > { %585 = vmatpush.msrb.mxu1 %v576_v6  ;;  %532 = vmatpush.msra.mxu3 %v505_v32 }
  0x67   : > { %454 = vmatmul.f32.gmra.mxu2 %v431_v53  ;;  %545 = vmatpush.msrb.mxu0 %v495_v7 }
  0x68   : > { %385 = vmatmul.f32.gmra.mxu0 %v362_v58  ;;  %586 = vmatpush.msrb.mxu1 %v575_v9 }
  0x69   : > { %408 = vmatmul.f32.gmra.mxu1 %v324_v46  ;;  %546 = vmatpush.msrb.mxu0 %v494_v8  ;;  %v472_v46 = vstv %s775_s24  ;;  %s611_s24 = scalar_lea.sflag [#allocation6], %s1289_s22 }
  0x6a   : > { %587 = vmatpush.msrb.mxu1 %v574_v11  ;;  %533 = vmatpush.msra.mxu3 %v504_v34  ;;  %v473_v50 = vadd.s32 %v472_v46, %v469_v45  ;;  %v474_v60 = vadd.s32 %v472_v46, %v470_v54 }
  0x6b   : > { %547 = vmatpush.msrb.mxu0 %v493_v10 }
  0x6c   : > { %588 = vmatpush.msrb.mxu1 %v573_v19  ;;  %534 = vmatpush.msra.mxu3 %v503_v36  ;;  %vm475_vm2 = vcmp.ge.s32.totalorder %v473_v50, 0  ;;  %vm477_vm3 = vcmp.lt.s32.totalorder %v473_v50, 16  ;;  %vm476_vm5 = vcmp.ge.s32.totalorder %v474_v60, 0  ;;  %vm478_vm6 = vcmp.lt.s32.totalorder %v474_v60, 16 }
  0x6d   : > { %548 = vmatpush.msrb.mxu0 %v492_v12  ;;  %vm479_vm4 = vmand %vm475_vm2, %vm477_vm3  ;;  %v879_v12 = vld [vmem:[%s1274_s4] ss:$0 sm:$0xff] }
  0x6e   : > { %589 = vmatpush.msrb.mxu1 %v572_v22  ;;  %535 = vmatpush.msra.mxu3 %v502_v38  ;;  %vm480_vm7 = vmand %vm476_vm5, %vm478_vm6 }
  0x6f   : > { %549 = vmatpush.msrb.mxu0 %v491_v13 }
  0x70   : > { %590 = vmatpush.msrb.mxu1 %v571_v25  ;;  %536 = vmatpush.msra.mxu3 %v501_v40 }
  0x71   : > { %550 = vmatpush.msrb.mxu0 %v490_v14 }
  0x72   : > { %591 = vmatpush.msrb.mxu1 %v570_v28  ;;  %537 = vmatpush.msra.mxu3 %v500_v42 }
  0x73   : > { %551 = vmatpush.msrb.mxu0 %v489_v15 }
  0x74   : > { %592 = vmatpush.msrb.mxu1 %v569_v31 }
  0x75   : > { %552 = vmatpush.msrb.mxu0 %v488_v16 }
  0x76   : > { %593 = vmatpush.msrb.mxu1 %v568_v33 }
  0x77   : > { %553 = vmatpush.msrb.mxu0 %v487_v18 }
  0x78   : > { %594 = vmatpush.msrb.mxu1 %v567_v35 }
  0x79   : > { %554 = vmatpush.msrb.mxu0 %v486_v21 }
  0x7a   : > { %595 = vmatpush.msrb.mxu1 %v566_v37 }
  0x7b   : > { %555 = vmatpush.msrb.mxu0 %v485_v24 }
  0x7c   : > { %596 = vmatpush.msrb.mxu1 %v565_v39 }
  0x7d   : > { %556 = vmatpush.msrb.mxu0 %v484_v27 }
  0x7e   : > { %597 = vmatpush.msrb.mxu1 %v564_v41 }
  0x7f   : > { %557 = vmatpush.msrb.mxu0 %v483_v30 }
  0x80   : > { %598 = vmatpush.msrb.mxu1 %v563_v43 }
  0xdd   : > { %v383_v47 = vpop.f32.mrf.mxu0 }
  0xde   : > { %v406_v48 = vpop.f32.mrf.mxu1 }
  0xdf   : > { %v407_v49 = vadd.f32 %v406_v48, %v383_v47 }
  0xe2   : > { %v452_v52 = vpop.f32.mrf.mxu2 }
  0xe3   : > { %v458_v53 = vadd.f32 %v452_v52, %v407_v49 }
  0xe5   : > { %v464_v55 = vadd.f32 %v878_v51, %v458_v53  ;;  %v386_v56 = vpop.f32.mrf.mxu0 }
  0xe6   : > { %v409_v57 = vpop.f32.mrf.mxu1 }
  0xe7   : > { %v466_v58 = vmax.f32 %v464_v55, 0.0  ;;  %v410_v59 = vadd.f32 %v409_v57, %v386_v56 }
  0xe9   : > { %776 = vmatmul.msk.f32.vlgmr.msrb.gmra.mxu0 %vm479_vm4, %v466_v58  ;;  %v481_v0 = vsel %vm479_vm4, %v466_v58, 0.0 }
  0xea   : > { %v455_v61 = vpop.f32.mrf.mxu2  ;;  %v579_v3 = vrot.slane %v481_v0, 2  ;;  %v518_v5 = vrot.slane %v481_v0, 1 }
  0xeb   : > { %v459_v62 = vadd.f32 %v455_v61, %v410_v59 }
  0xed   : > { %v465_v63 = vadd.f32 %v878_v51, %v459_v62 }
  0xef   : > { %v467_v1 = vmax.f32 %v465_v63, 0.0 }
  0xf1   : > { %v482_v2 = vsel %vm480_vm7, %v467_v1, 0.0 }
  0xf2   : > { %v580_v4 = vrot.slane %v482_v2, 2  ;;  %v519_v6 = vrot.slane %v482_v2, 1 }
  0xf4   : > { %v520_v7 = vsel %vm360_vm1, %v518_v5, %v519_v6  ;;  %v581_v8 = vsel %vm429_vm0, %v579_v3, %v580_v4 }
  0xf5   : > { %538 = vmatmul.f32.vlgmr.msra.gmra.mxu3 %v520_v7  ;;  %599 = vmatmul.f32.vlgmr.msrb.gmra.mxu1 %v581_v8 }
 0x166   : > { %v559_v9 = vpop.f32.mrf.mxu0 }
 0x172   : > { %v600_v13 = vpop.f32.mrf.mxu1 }
 0x178   : > { %v539_v10 = vpop.f32.mrf.mxu3 }
 0x179   : > { %v560_v11 = vadd.f32 %v559_v9, %v539_v10 }
 0x17b   : > { %v603_v14 = vadd.f32 %v600_v13, %v560_v11 }
 0x17d   : > { %v608_v15 = vadd.f32 %v879_v12, %v603_v14 }
 0x17f   : > { %609 = vst [vmem:[%s1288_s21] sm:$0xff] %v608_v15 }
 0x180   : > { %967 = shalt.err (!%p964_p13)
}
 0x181   : > { %792 = dma.vmem_to_hbm [thread:$0]  (%p1132_p3), %s626_s26, 128, %s628_s10, %s611_s24  }
 0x182 PF: > { %p809_p0 = scmp.ge.s32.totalorder %s1044_s25, 2  ;;  %s639_s28 = sand.u32 1, %s1016_s18  }
 0x183   : > { %s640_s15 = scalar_lea.sflag [#allocation6], %s639_s28 }
 0x184   : > { %p802_p1 = pnand %p809_p0, %p1141_p8 }
 0x186   : > { %p803_p2 = pneg %p802_p1 }
 0x188   : > { %1011 = dma.done.wait (%p803_p2), %s640_s15, 128  }
 0x189   : > { %1013 = vsyncadd (%p803_p2), %s640_s15, 4294967168  ;;  %s20_s25 = sadd.s32 1, %s1044_s25   ;;  %s1290_s22 = sld [smem:[#allocation16_spill]] }
 0x18a   : > { %p17_p4 = scmp.ge.s32.totalorder %s20_s25, 6   ;;  %s1291_s7 = sld [smem:[#allocation17_spill]] }
 0x18b   : > { %s1292_s24 = sld [smem:[#allocation18_spill]]  ;;  %s1293_s18 = smov %s1020_s19 }
 0x18c   : > { %s1294_s19 = smov %s1024_s20  ;;  %s1295_s20 = smov %s1162_s16 }
 0x18d   : > { %s1296_s21 = smov %s1036_s23  ;;  %19 = sbr.rel (!%p17_p4) target bundleno = 7 (0x7), region = 160 }
 0x190   : > { %s1297_s23 = smov %s1291_s7 }
 0x192   :  { %646 = vsyncpa [#allocation5], 1 }
 0x193   :  { %648 = vsyncpa [#allocation5 + $0x1], 1 }
 0x194   :  { %649 = vsyncpa [#allocation8], 1 }
 0x195   :  { %650 = vsyncpa [#allocation6], 1 }
 0x196   :  { %652 = vsyncpa [#allocation6 + $0x1], 1 }
 0x197   :  { %653 = vsyncmov [#allocation3] }
 0x19a   :  { %s654_s8 = vpop.sfrf %653 }
 0x19b   :  { %p782_p3 = scmp.ne.s32.totalorder %s654_s8, 0 }
 0x19d   :  { %658 = shalt.err (%p782_p3)  }
 0x19e   :  { %660 = vsyncmov [#allocation3 + $0x1] }
 0x1a1   :  { %s661_s16 = vpop.sfrf %660 }
 0x1a2   :  { %p783_p8 = scmp.ne.s32.totalorder %s661_s16, 0 }
 0x1a4   :  { %665 = shalt.err (%p783_p8)  }

</bundles_post_ra>
